<compile_context>
chip_gen: v7x
topology: tpu7x:2x2x1
jax: 0.10.0
libtpu: 0.0.40
codegen_flags: <defaults>
</compile_context>

<pallas_src>
import math
import jax
import jax.numpy as jnp
from jax.experimental import pallas as pl
from jax.experimental.pallas import tpu as pltpu


# ---------------------------------------------------------------------------
# Kernel
# ---------------------------------------------------------------------------
def _vec_linear_kernel(x_ref, w_ref, b_ref, o_ref, acc_ref):
    # x_ref: (E_BLK, TB, TK)   w_ref: (E_BLK, TK, TN)   b_ref: (E_BLK, 1, TN)
    # o_ref: (E_BLK, TB, TN)   acc_ref: (E_BLK, TB, TN) f32 scratch
    k = pl.program_id(3)

    @pl.when(k == 0)
    def _init():
        acc_ref[...] = jnp.zeros_like(acc_ref)

    # Batched matmul over the ensemble-block axis; bf16 weights are upcast in
    # VMEM/vregs (HBM traffic already paid in bf16), f32 accumulation on the MXU.
    acc_ref[...] += jnp.einsum(
        "ebk,ekn->ebn",
        x_ref[...],
        w_ref[...],
        preferred_element_type=jnp.float32,
    )

    @pl.when(k == pl.num_programs(3) - 1)
    def _finalize():
        out = acc_ref[...] + b_ref[...].astype(jnp.float32)
        o_ref[...] = out.astype(o_ref.dtype)


# ---------------------------------------------------------------------------
# Tiling heuristics
# ---------------------------------------------------------------------------
def _largest_divisor_tile(dim, cap, granularity):
    """Largest multiple of `granularity` that divides `dim` and is <= cap.
    Falls back to the full dim (always a legal block by the full-extent rule)."""
    if dim <= cap:
        return dim
    t = (cap // granularity) * granularity
    while t >= granularity:
        if dim % t == 0:
            return t
        t -= granularity
    return dim


def _pick_ensemble_block(E, per_member_block_bytes,
                         small_member_bytes=512 * 1024,
                         target_step_bytes=2 * 1024 * 1024):
    """Batch multiple ensemble members per grid step when per-member tiles are tiny."""
    if per_member_block_bytes >= small_member_bytes:
        return 1
    e_blk = int(min(E, max(1, target_step_bytes // max(per_member_block_bytes, 1))))
    while E % e_blk != 0:
        e_blk -= 1
    return max(1, e_blk)


# ---------------------------------------------------------------------------
# Wrapper
# ---------------------------------------------------------------------------
def vectorized_linear(x, weight, bias, *, weight_stream_dtype=jnp.bfloat16):
    """x: (E, B, K), weight: (E, K, N), bias: (E, 1, N) -> (E, B, N)."""
    E, B, K = x.shape
    Ew, Kw, N = weight.shape
    assert (Ew, Kw) == (E, K), "weight shape mismatch"
    assert bias.shape == (E, 1, N), "bias shape mismatch"
    out_dtype = x.dtype

    # Stream weights in a narrow dtype (bf16 by default) — the weight DMA dominates
    # HBM traffic in this read-once regime. Bias / accumulation stay f32.
    w = weight if weight_stream_dtype is None else weight.astype(weight_stream_dtype)

    # MXU / lane-aligned tile caps (multiples of 256 for v6e/v7x, also 128-aligned
    # for v5e). Caps keep double-buffered tiles a few MiB — safe under the 16/32 MiB
    # scoped defaults and v7x's 64 MiB physical VMEM.
    TB = _largest_divisor_tile(B, 512, 8)      # sublane axis of x / out (f32: mult of 8)
    TN = _largest_divisor_tile(N, 256, 128)    # lane axis of w / bias / out
    TK = _largest_divisor_tile(K, 512, 128)    # lane axis of x, sublane axis of w

    xb = jnp.dtype(x.dtype).itemsize
    wb = jnp.dtype(w.dtype).itemsize
    ob = jnp.dtype(out_dtype).itemsize
    per_member = (TB * TK * xb          # x tile
                  + TK * TN * wb        # weight tile
                  + TB * TN * (ob + 4)  # out tile + f32 accumulator
                  + TN * 4)             # bias tile
    E_BLK = _pick_ensemble_block(E, per_member)

    grid = (E // E_BLK, B // TB, N // TN, K // TK)

    return pl.pallas_call(
        _vec_linear_kernel,
        out_shape=jax.ShapeDtypeStruct((E, B, N), out_dtype),
        grid_spec=pltpu.PrefetchScalarGridSpec(
            num_scalar_prefetch=0,
            grid=grid,
            in_specs=[
                pl.BlockSpec((E_BLK, TB, TK), lambda e, b, n, k: (e, b, k)),
                pl.BlockSpec((E_BLK, TK, TN), lambda e, b, n, k: (e, k, n)),
                # bias: independent of the B and K grid axes -> fetched/added once per (e, n)
                pl.BlockSpec((E_BLK, 1, TN), lambda e, b, n, k: (e, 0, n)),
            ],
            out_specs=pl.BlockSpec((E_BLK, TB, TN), lambda e, b, n, k: (e, b, n)),
            scratch_shapes=[pltpu.VMEM((E_BLK, TB, TN), jnp.float32)],
        ),
        compiler_params=pltpu.CompilerParams(
            # E/B/N are independent (megacore-shardable); K is the reduction axis.
            dimension_semantics=("parallel", "parallel", "parallel", "arbitrary"),
            # Explicit, conservative scoped-VMEM budget: fits v5e/v6e/v7x alike.
            vmem_limit_bytes=32 * 1024 * 1024,
        ),
    )(x, w, bias)


# ---------------------------------------------------------------------------
# Parameter init (matches VectorizedLinear.reset_parameters())
# ---------------------------------------------------------------------------
def init_params(key, in_features, out_features, ensemble_size, dtype=jnp.float32):
    """kaiming_uniform_(a=sqrt(5)) per (in, out) slice == U(-1/sqrt(fan_in), 1/sqrt(fan_in));
    bias ~ U(-1/sqrt(fan_in), 1/sqrt(fan_in)), fan_in = in_features."""
    kw, kb = jax.random.split(key)
    fan_in = in_features
    bound = 1.0 / math.sqrt(fan_in) if fan_in > 0 else 0.0
    weight = jax.random.uniform(
        kw, (ensemble_size, in_features, out_features), dtype=dtype,
        minval=-bound, maxval=bound)
    bias = jax.random.uniform(
        kb, (ensemble_size, 1, out_features), dtype=dtype,
        minval=-bound, maxval=bound)
    return weight, bias


if __name__ == "__main__":
    ensemble_size = 4
    batch = 8
    in_features = 32
    out_features = 32

    key = jax.random.PRNGKey(0)
    kx, kp = jax.random.split(key)

    x = jax.random.normal(kx, (ensemble_size, batch, in_features), dtype=jnp.float32)
    weight, bias = init_params(kp, in_features, out_features, ensemble_size)

    out = vectorized_linear(x, weight, bias)
    out = jax.block_until_ready(out)

    # Reference: exact module semantics in f32. Tolerance accounts for the bf16
    # weight streaming inside the kernel (rel err ~2^-9 on the dominant term).
    ref = jnp.einsum("ebk,ekn->ebn", x, weight) + bias
    assert out.shape == (ensemble_size, batch, out_features)
    assert jnp.allclose(out, ref, atol=2e-2, rtol=2e-2), float(jnp.max(jnp.abs(out - ref)))

    # NOTE: when N < 128 the output store is lane-masked; a wrapper-side fold of the
    # ensemble axis into the lane dim would make it lane-dense, at the cost of an
    # extra transpose outside the kernel. Not needed at realistic N (>=128).

    print("KERNEL_OK")
</pallas_src>

<mosaic_0001>
module attributes {stable_mosaic.version = 11 : i64} {
  func.func @_vec_linear_kernel(%arg0: i32, %arg1: i32, %arg2: i32, %arg3: i32, %arg4: memref<4x8x32xf32, #tpu.memory_space<vmem>>, %arg5: memref<4x32x32xbf16, #tpu.memory_space<vmem>>, %arg6: memref<4x1x32xf32, #tpu.memory_space<vmem>>, %arg7: memref<4x8x32xf32, #tpu.memory_space<vmem>>, %arg8: memref<4x8x32xf32, #tpu.memory_space<vmem>>) attributes {dimension_semantics = [#tpu.dimension_semantics<parallel>, #tpu.dimension_semantics<parallel>, #tpu.dimension_semantics<parallel>, #tpu.dimension_semantics<arbitrary>], iteration_bounds = array<i64: 1, 1, 1, 1>, scalar_prefetch = 0 : i64, scratch_operands = 1 : i64, tpu.core_type = #tpu.core_type<tc>, window_params = [{transform_indices = @transform_0, window_bounds = array<i64: 4, 8, 32>}, {transform_indices = @transform_1, window_bounds = array<i64: 4, 32, 32>}, {transform_indices = @transform_2, window_bounds = array<i64: 4, 1, 32>}, {transform_indices = @transform_3, window_bounds = array<i64: 4, 8, 32>}]} {
    %c0_i32 = arith.constant 0 : i32
    %0 = arith.cmpi eq, %arg3, %c0_i32 : i32
    %1 = arith.extui %0 : i1 to i32
    %c0_i32_0 = arith.constant 0 : i32
    %2 = arith.cmpi ne, %1, %c0_i32_0 : i32
    scf.if %2 {
      %cst_14 = arith.constant 0.000000e+00 : f32
      %12 = vector.broadcast %cst_14 : f32 to vector<4x8x32xf32>
      %c0_15 = arith.constant 0 : index
      %c0_16 = arith.constant 0 : index
      %c0_17 = arith.constant 0 : index
      %13 = vector.load %arg8[%c0_15, %c0_16, %c0_17] : memref<4x8x32xf32, #tpu.memory_space<vmem>>, vector<4x8x32xf32>
      tpu.vector_store %arg8[%c0_15, %c0_16, %c0_17], %12 {strides = array<i32>} : memref<4x8x32xf32, #tpu.memory_space<vmem>>, vector<4x8x32xf32>,
    } else {
    }
    %c0 = arith.constant 0 : index
    %c0_1 = arith.constant 0 : index
    %c0_2 = arith.constant 0 : index
    %3 = vector.load %arg8[%c0, %c0_1, %c0_2] : memref<4x8x32xf32, #tpu.memory_space<vmem>>, vector<4x8x32xf32>
    %c0_3 = arith.constant 0 : index
    %c0_4 = arith.constant 0 : index
    %c0_5 = arith.constant 0 : index
    %4 = vector.load %arg4[%c0_3, %c0_4, %c0_5] : memref<4x8x32xf32, #tpu.memory_space<vmem>>, vector<4x8x32xf32>
    %c0_6 = arith.constant 0 : index
    %c0_7 = arith.constant 0 : index
    %c0_8 = arith.constant 0 : index
    %5 = vector.load %arg5[%c0_6, %c0_7, %c0_8] : memref<4x32x32xbf16, #tpu.memory_space<vmem>>, vector<4x32x32xbf16>
    "tpu.trace_start"() <{level = 10 : i32, message = "ebk,ekn->ebn"}> : () -> ()
    %cst = arith.constant dense<0.000000e+00> : vector<4x8x32xf32>
    %6 = tpu.matmul %4, %5, %cst {dimension_numbers = #tpu.dot_dimension_numbers<[2], [1], [1], [2], [0, 0, 0, 1, 1, 2], [0], [0]>} : vector<4x8x32xf32>, vector<4x32x32xbf16>, vector<4x8x32xf32> -> vector<4x8x32xf32>
    "tpu.trace_stop"() : () -> ()
    %7 = arith.addf %3, %6 : vector<4x8x32xf32>
    %c0_9 = arith.constant 0 : index
    %c0_10 = arith.constant 0 : index
    %c0_11 = arith.constant 0 : index
    %8 = vector.load %arg8[%c0_9, %c0_10, %c0_11] : memref<4x8x32xf32, #tpu.memory_space<vmem>>, vector<4x8x32xf32>
    tpu.vector_store %arg8[%c0_9, %c0_10, %c0_11], %7 {strides = array<i32>} : memref<4x8x32xf32, #tpu.memory_space<vmem>>, vector<4x8x32xf32>,
    %c0_i32_12 = arith.constant 0 : i32
    %9 = arith.cmpi eq, %arg3, %c0_i32_12 : i32
    %10 = arith.extui %9 : i1 to i32
    %c0_i32_13 = arith.constant 0 : i32
    %11 = arith.cmpi ne, %10, %c0_i32_13 : i32
    scf.if %11 {
      %c0_14 = arith.constant 0 : index
      %c0_15 = arith.constant 0 : index
      %c0_16 = arith.constant 0 : index
      %12 = vector.load %arg8[%c0_14, %c0_15, %c0_16] : memref<4x8x32xf32, #tpu.memory_space<vmem>>, vector<4x8x32xf32>
      %c0_17 = arith.constant 0 : index
      %c0_18 = arith.constant 0 : index
      %c0_19 = arith.constant 0 : index
      %13 = vector.load %arg6[%c0_17, %c0_18, %c0_19] : memref<4x1x32xf32, #tpu.memory_space<vmem>>, vector<4x1x32xf32>
      %14 = vector.broadcast %13 : vector<4x1x32xf32> to vector<4x8x32xf32>
      %15 = arith.addf %12, %14 : vector<4x8x32xf32>
      %c0_20 = arith.constant 0 : index
      %c0_21 = arith.constant 0 : index
      %c0_22 = arith.constant 0 : index
      %16 = vector.load %arg7[%c0_20, %c0_21, %c0_22] : memref<4x8x32xf32, #tpu.memory_space<vmem>>, vector<4x8x32xf32>
      tpu.vector_store %arg7[%c0_20, %c0_21, %c0_22], %15 {strides = array<i32>} : memref<4x8x32xf32, #tpu.memory_space<vmem>>, vector<4x8x32xf32>,
    } else {
    }
    return
  }
  func.func @transform_0(%arg0: i32, %arg1: i32, %arg2: i32, %arg3: i32) -> (i32, i32, i32) {
    %c0_i32 = arith.constant 0 : i32
    return %arg0, %arg1, %arg3 : i32, i32, i32
  }
  func.func @transform_1(%arg0: i32, %arg1: i32, %arg2: i32, %arg3: i32) -> (i32, i32, i32) {
    %c0_i32 = arith.constant 0 : i32
    return %arg0, %arg3, %arg2 : i32, i32, i32
  }
  func.func @transform_2(%arg0: i32, %arg1: i32, %arg2: i32, %arg3: i32) -> (i32, i32, i32) {
    %c0_i32 = arith.constant 0 : i32
    %c0_i32_0 = arith.constant 0 : i32
    return %arg0, %c0_i32, %arg2 : i32, i32, i32
  }
  func.func @transform_3(%arg0: i32, %arg1: i32, %arg2: i32, %arg3: i32) -> (i32, i32, i32) {
    %c0_i32 = arith.constant 0 : i32
    return %arg0, %arg1, %arg2 : i32, i32, i32
  }
}

</mosaic_0001>

<bundles_post_ra>
// kernel: tpu_custom_call.1
= control target key start
LH: loop header
LB: loop body
LE: loop exit
PB: predicated region body
PF: predicated region fallthrough
CT: control target
= control target key end

     0   :  { %8 = vsyncpa [#allocation4], 0  ;;  %s607_s0 = inlined_call_operand.hbm [shape: f32[4,8,32], index: 0, kind: input, shape index: {}]   ;;  %s608_s1 = inlined_call_operand.hbm [shape: bf16[4,32,32], index: 1, kind: input, shape index: {}]   ;;  %s609_s2 = inlined_call_operand.vmem [shape: f32[4,1,32], index: 2, kind: input, shape index: {}]   ;;  %s610_s3 = inlined_call_operand.hbm [shape: f32[4,8,32], index: 3, kind: output, shape index: {}]  }
   0x1   :  { %9 = vsyncpa [#allocation7], 0 }
   0x2   :  { %10 = vsyncpa [#allocation5], 0  ;;  %s504_s12 = smov [#allocation3]   ;;  %s432_s16 = scalar_lea.hbm %s607_s0, 512 }
   0x3   :  { %s16_s13 = sshll.u32 %s504_s12, 4  ;;  %p433_p0 = scmp.ne.s32.totalorder %s607_s0, %s432_s16  ;;  %s17_s13 = int_to_ptr.vmem [resolvable:$true] %s16_s13 }
   0x4   :  { %p436_p1 = scmp.lt.u32.totalorder %s432_s16, %s607_s0 }
   0x6   :  { %p438_p2 = pnand %p436_p1, %p433_p0 }
   0x8   :  { %441 = shalt.err (!%p438_p2)
}
   0x9   :  { %s442_s21 = scalar_lea.vmem %s17_s13, 512  ;;  %p447_p4 = scmp.lt.s32.totalorder %s17_s13, %s17_s13 }
   0xa   :  { %p443_p3 = scmp.ne.s32.totalorder %s17_s13, %s442_s21  ;;  %p448_p5 = scmp.lt.s32.totalorder %s442_s21, %s442_s21 }
   0xc   :  { %p449_p6 = por %p448_p5, %p447_p4 }
   0xe   :  { %p450_p7 = pnand %p449_p6, %p443_p3 }
  0x10   :  { %453 = shalt.err (!%p450_p7)
}
  0x11   :  { %s505_s22 = smov 128   ;;  %s506_s23 = smov 8  }
  0x12   :  { %22 = dma.hbm_to_vmem [thread:$0]  %s607_s0, 512, %s17_s13, [#allocation4], %s505_s22, %s505_s22, %s506_s23  }
  0x13   :  { %s507_s26 = smov [#allocation6]   ;;  %s454_s30 = scalar_lea.hbm %s608_s1, 1024 }
  0x14   :  { %s28_s27 = sshll.u32 %s507_s26, 4  ;;  %p455_p8 = scmp.ne.s32.totalorder %s608_s1, %s454_s30  ;;  %s29_s27 = int_to_ptr.vmem [resolvable:$true] %s28_s27 }
  0x15   :  { %p458_p9 = scmp.lt.u32.totalorder %s454_s30, %s608_s1 }
  0x17   :  { %p460_p10 = pnand %p458_p9, %p455_p8 }
  0x19   :  { %463 = shalt.err (!%p460_p10)
}
  0x1a   :  { %s464_s8 = scalar_lea.vmem %s29_s27, 1024  ;;  %p469_p12 = scmp.lt.s32.totalorder %s29_s27, %s29_s27 }
  0x1b   :  { %p465_p11 = scmp.ne.s32.totalorder %s29_s27, %s464_s8  ;;  %p470_p13 = scmp.lt.s32.totalorder %s464_s8, %s464_s8 }
  0x1d   :  { %p471_p0 = por %p470_p13, %p469_p12 }
  0x1f   :  { %p472_p1 = pnand %p471_p0, %p465_p11 }
  0x21   :  { %475 = shalt.err (!%p472_p1)
}
  0x22   :  { %s508_s0 = smov 64   ;;  %s509_s9 = smov 4  }
  0x23   :  { %34 = dma.hbm_to_vmem [thread:$0]  %s608_s1, 1024, %s29_s27, [#allocation7], %s508_s0, %s508_s0, %s509_s9  }
  0x24   :  { %498 = dma.done.wait [#allocation4], 512  }
  0x25   :  { %499 = vsyncadd [#allocation4], 4294966784 }
  0x26   :  { %500 = dma.done.wait [#allocation7], 1024  }
  0x27   :  { %501 = vsyncadd [#allocation7], 4294966272  ;;  %vm48_vm0 = vcmask 261120   ;;  %v510_v0 = vmov 0.0   ;;  %vm511_vm1 = vmmov 0   ;;  %v424_v1 = vld [vmem:[#allocation6] sm:$0xff]  }
  0x28   :  { %387 = vmatprep.subr.bf16.mxu0 %v510_v0  ;;  %394 = vmatprep.subr.bf16.mxu1 %v510_v0  ;;  %49 = vst.msk [vmem:[#allocation2] sm:$0xff] %vm48_vm0, %v510_v0  ;;  %50 = vst.msk [vmem:[#allocation2 + $0x8] sm:$0xff] %vm48_vm0, %v510_v0  ;;  %v425_v2 = vld [vmem:[#allocation6 + $0x10] sm:$0xff]   ;;  %v426_v3 = vld [vmem:[#allocation6 + $0x8] sm:$0xff]   ;;  %s512_s19 = smov [#allocation8]  }
  0x29   :  { %51 = vst.msk [vmem:[#allocation2 + $0x10] sm:$0xff] %vm48_vm0, %v510_v0  ;;  %52 = vst.msk [vmem:[#allocation2 + $0x18] sm:$0xff] %vm48_vm0, %v510_v0  ;;  %391 = vmatprep.mubr.msk.f32.mxu0 %vm511_vm1, %v510_v0  ;;  %398 = vmatprep.mubr.msk.f32.mxu1 %vm511_vm1, %v510_v0  ;;  %v427_v4 = vld [vmem:[#allocation6 + $0x18] sm:$0xff]   ;;  %v57_v5 = vld [vmem:[#allocation3] sm:$0xff]  ;;  %s346_s20 = sshll.u32 %s512_s19, 4  ;;  %s347_s20 = int_to_ptr.vmem [resolvable:$true] %s346_s20 }
  0x2a   :  { %388 = vmatpush3.bf16.msra.mxu0 %v424_v1  ;;  %395 = vmatpush3.bf16.msra.mxu1 %v425_v2  ;;  %v58_v6 = vld [vmem:[#allocation3 + $0x8] sm:$0xff]  ;;  %v428_v7 = vld [vmem:[#allocation6 + $0x20] sm:$0xff]   ;;  %v429_v8 = vld [vmem:[#allocation6 + $0x30] sm:$0xff]   ;;  %s476_s21 = scalar_lea.vmem %s347_s20, 512  ;;  %p481_p3 = scmp.lt.s32.totalorder %s347_s20, %s347_s20 }
  0x2b   :  { %389 = vmatprep.subr.bf16.mxu0 %v510_v0  ;;  %396 = vmatprep.subr.bf16.mxu1 %v510_v0  ;;  %v430_v9 = vld [vmem:[#allocation6 + $0x28] sm:$0xff]   ;;  %v431_v10 = vld [vmem:[#allocation6 + $0x38] sm:$0xff]   ;;  %v59_v11 = vld [vmem:[#allocation3 + $0x10] sm:$0xff]  ;;  %p477_p2 = scmp.ne.s32.totalorder %s347_s20, %s476_s21  ;;  %p482_p4 = scmp.lt.s32.totalorder %s476_s21, %s476_s21 }
  0x2c   :  { %v60_v12 = vld [vmem:[#allocation3 + $0x18] sm:$0xff]  ;;  %v371_v24 = vld [vmem:[%s609_s2] ss:$0 sm:$0xff]  ;;  %v372_v28 = vld [vmem:[%s609_s2 + $0x1] ss:$0 sm:$0xff] }
  0x2d   :  { %v373_v35 = vld [vmem:[%s609_s2 + $0x2] ss:$0 sm:$0xff]  ;;  %v374_v36 = vld [vmem:[%s609_s2 + $0x3] ss:$0 sm:$0xff]  ;;  %p483_p5 = por %p482_p4, %p481_p3 }
  0x2e   :  { %390 = vmatpush3.bf16.msra.mxu0 %v426_v3  ;;  %397 = vmatpush3.bf16.msra.mxu1 %v427_v4 }
  0x2f   :  { %401 = vmatprep.subr.bf16.mxu0 %v510_v0  ;;  %408 = vmatprep.subr.bf16.mxu1 %v510_v0  ;;  %v53_v13 = vld [vmem:[#allocation2] sm:$0xff]  ;;  %v54_v14 = vld [vmem:[#allocation2 + $0x8] sm:$0xff]  ;;  %p484_p6 = pnand %p483_p5, %p477_p2 }
  0x30   :  { %v55_v21 = vld [vmem:[#allocation2 + $0x10] sm:$0xff]  ;;  %v56_v22 = vld [vmem:[#allocation2 + $0x18] sm:$0xff] }
  0x31   :  { %392 = vmatmul.mubr.msk.f32.vlgmr.msra.gmra.mrb[0].mxu0 %vm48_vm0, %v57_v5  ;;  %399 = vmatmul.mubr.msk.f32.vlgmr.msra.gmra.mrb[0].mxu1 %vm48_vm0, %v58_v6 }
  0x32   :  { %402 = vmatpush3.bf16.msra.mxu0 %v428_v7  ;;  %409 = vmatpush3.bf16.msra.mxu1 %v429_v8 }
  0x33   :  { %403 = vmatprep.subr.bf16.mxu0 %v510_v0  ;;  %410 = vmatprep.subr.bf16.mxu1 %v510_v0 }
  0x34   :  { %405 = vmatprep.mubr.msk.f32.mxu0 %vm511_vm1, %v510_v0  ;;  %412 = vmatprep.mubr.msk.f32.mxu1 %vm511_vm1, %v510_v0 }
  0x36   :  { %404 = vmatpush3.bf16.msra.mxu0 %v430_v9  ;;  %411 = vmatpush3.bf16.msra.mxu1 %v431_v10 }
  0x39   :  { %406 = vmatmul.mubr.msk.f32.vlgmr.msra.gmra.mrb[2].mxu0 %vm48_vm0, %v59_v11  ;;  %413 = vmatmul.mubr.msk.f32.vlgmr.msra.gmra.mrb[2].mxu1 %vm48_vm0, %v60_v12 }
 0x104   :  { %v127_v15 = vpop.f32.mrb[0].mxu0  ;;  %v180_v17 = vpop.f32.mrb[0].mxu1 }
 0x105   :  { %v290_v16 = vadd.f32 %v127_v15, %v53_v13  ;;  %v393_v18 = vpop.f32.mrb[1].mxu0  ;;  %v291_v19 = vadd.f32 %v180_v17, %v54_v14  ;;  %v400_v20 = vpop.f32.mrb[1].mxu1 }
 0x107   :  { %294 = vst.msk [vmem:[#allocation2] sm:$0xff] %vm48_vm0, %v290_v16  ;;  %295 = vst.msk [vmem:[#allocation2 + $0x8] sm:$0xff] %vm48_vm0, %v291_v19 }
 0x10c   :  { %v233_v23 = vpop.f32.mrb[2].mxu0  ;;  %v286_v26 = vpop.f32.mrb[2].mxu1 }
 0x10d   :  { %v292_v25 = vadd.f32 %v233_v23, %v55_v21  ;;  %v407_v27 = vpop.f32.mrb[3].mxu0  ;;  %v293_v29 = vadd.f32 %v286_v26, %v56_v22  ;;  %v414_v30 = vpop.f32.mrb[3].mxu1 }
 0x10e   :  { %v301_v31 = vld [vmem:[#allocation2] sm:$0xff]  ;;  %v302_v32 = vld [vmem:[#allocation2 + $0x8] sm:$0xff] }
 0x10f   :  { %296 = vst.msk [vmem:[#allocation2 + $0x10] sm:$0xff] %vm48_vm0, %v292_v25  ;;  %v333_v33 = vadd.f32 %v371_v24, %v301_v31  ;;  %297 = vst.msk [vmem:[#allocation2 + $0x18] sm:$0xff] %vm48_vm0, %v293_v29  ;;  %v334_v34 = vadd.f32 %v372_v28, %v302_v32 }
 0x111   :  { %337 = vst.msk [vmem:[#allocation8] sm:$0xff] %vm48_vm0, %v333_v33  ;;  %338 = vst.msk [vmem:[#allocation8 + $0x8] sm:$0xff] %vm48_vm0, %v334_v34 }
 0x116   :  { %v303_v37 = vld [vmem:[#allocation2 + $0x10] sm:$0xff]  ;;  %v304_v38 = vld [vmem:[#allocation2 + $0x18] sm:$0xff] }
 0x117   :  { %v335_v39 = vadd.f32 %v373_v35, %v303_v37  ;;  %v336_v40 = vadd.f32 %v374_v36, %v304_v38 }
 0x119   :  { %339 = vst.msk [vmem:[#allocation8 + $0x10] sm:$0xff] %vm48_vm0, %v335_v39  ;;  %340 = vst.msk [vmem:[#allocation8 + $0x18] sm:$0xff] %vm48_vm0, %v336_v40 }
 0x11a   :  { %487 = shalt.err (!%p484_p6)
}
 0x11b   :  { %s488_s25 = scalar_lea.hbm %s610_s3, 512 }
 0x11c   :  { %p489_p7 = scmp.ne.s32.totalorder %s610_s3, %s488_s25  ;;  %p492_p8 = scmp.lt.u32.totalorder %s488_s25, %s610_s3 }
 0x11e   :  { %p494_p9 = pnand %p492_p8, %p489_p7 }
 0x120   :  { %497 = shalt.err (!%p494_p9)
}
 0x121   :  { %352 = dma.vmem_to_hbm [thread:$0]  %s347_s20, 512, %s610_s3, [#allocation5], %s505_s22, %s505_s22, %s506_s23  }
 0x122   :  { %502 = dma.done.wait [#allocation5], 512  }
 0x123   :  { %503 = vsyncadd [#allocation5], 4294966784 }
 0x124   :  { %356 = vsyncpa [#allocation4], 1 }
 0x125   :  { %357 = vsyncpa [#allocation7], 1 }
 0x126   :  { %358 = vsyncpa [#allocation5], 1 }

</bundles_post_ra>
